<compile_context>
chip_gen: v5e
topology: v5e:2x2
jax: 0.10.0
libtpu: 0.0.40
codegen_flags: <defaults>
</compile_context>

<pallas_src>
import functools

import numpy as np
import jax
import jax.numpy as jnp
from jax.experimental import pallas as pl
from jax.experimental.pallas import tpu as pltpu


# --------------------------------------------------------------------------
# VMEM limit (generation-aware)
# --------------------------------------------------------------------------
@functools.lru_cache(maxsize=None)
def _vmem_limit_bytes():
    try:
        cap = int(pltpu.get_tpu_info().vmem_capacity_bytes)
    except Exception:
        return 32 * 1024 * 1024            # conservative fallback (safe on v7x)
    # ~3/4 of physical VMEM: ~96 MiB on v5e/v6e (128 MiB), ~48 MiB on v7x (64 MiB).
    return max(32 * 1024 * 1024, min((cap * 3) // 4, 100 * 1024 * 1024))


# --------------------------------------------------------------------------
# Tiling helpers
# --------------------------------------------------------------------------
def _pick_tile(dim, preferred, align):
    """Largest multiple of `align` that divides `dim` and is <= preferred; else dim."""
    if dim <= preferred:
        return dim
    t = (preferred // align) * align
    while t >= align:
        if dim % t == 0:
            return t
        t -= align
    return dim


def _lane_align(dim):
    # v6e/v7x MXU is 2x256^2: feed 256-wide K/N tiles when the dim allows it.
    return 256 if dim % 256 == 0 else 128


def _pick_tiles(rows, vocab, hidden, *, prefer_two_row_tiles=False):
    row_align = 16 if rows % 16 == 0 else 8          # bf16 packs (16,128) per vreg
    tm = _pick_tile(rows, 512, row_align)
    if prefer_two_row_tiles and rows // tm < 2:
        half = rows // 2
        if half >= row_align and half % row_align == 0 and rows % half == 0:
            tm = half                                # even 2-way split for v7x megacore
    tn = _pick_tile(vocab, 512, _lane_align(vocab))
    tk = _pick_tile(hidden, 512, _lane_align(hidden))
    return tm, tn, tk


# --------------------------------------------------------------------------
# Pallas kernel 1: per-model decoder logits  logits[m] = h[m] @ W[m] + b[m]
#   grid = (row_tiles, M, vocab_tiles, K_tiles); K innermost + f32 VMEM accumulator.
#   h/W are bf16, accumulation and output are f32.
# --------------------------------------------------------------------------
def _logits_kernel(h_ref, w_ref, b_ref, o_ref, acc_ref):
    k = pl.program_id(3)

    @pl.when(k == 0)
    def _():
        acc_ref[...] = jnp.zeros_like(acc_ref)

    acc_ref[...] += jnp.dot(h_ref[...], w_ref[...],
                            preferred_element_type=jnp.float32)

    @pl.when(k == pl.num_programs(3) - 1)
    def _():
        o_ref[...] = (acc_ref[...] + b_ref[...]).astype(o_ref.dtype)


def submodel_logits(h_stacked, w_stacked, b_stacked):
    # h_stacked: [M, R, H] bf16, w_stacked: [M, H, V] bf16, b_stacked: [M, 1, V] f32
    # -> [M, R, V] f32
    M, R, H = h_stacked.shape
    V = w_stacked.shape[-1]
    tm, tn, tk = _pick_tiles(R, V, H, prefer_two_row_tiles=True)
    grid = (R // tm, M, V // tn, H // tk)            # row tiles outermost (megacore)
    return pl.pallas_call(
        _logits_kernel,
        out_shape=jax.ShapeDtypeStruct((M, R, V), jnp.float32),
        grid_spec=pltpu.PrefetchScalarGridSpec(
            num_scalar_prefetch=0,
            grid=grid,
            in_specs=[
                pl.BlockSpec((None, tm, tk), lambda i, m, j, k: (m, i, k)),
                pl.BlockSpec((None, tk, tn), lambda i, m, j, k: (m, k, j)),
                pl.BlockSpec((None, 1, tn), lambda i, m, j, k: (m, 0, j)),
            ],
            out_specs=pl.BlockSpec((None, tm, tn), lambda i, m, j, k: (m, i, j)),
            scratch_shapes=[pltpu.VMEM((tm, tn), jnp.float32)],
        ),
        compiler_params=pltpu.CompilerParams(
            dimension_semantics=("parallel", "parallel", "parallel", "arbitrary"),
            vmem_limit_bytes=_vmem_limit_bytes(),
        ),
    )(h_stacked, w_stacked, b_stacked)


# --------------------------------------------------------------------------
# Pallas kernel 2: FUSED submodel matmul + ensemble mean  (method == 'average')
#   out = (sum_m h[m] @ W[m] + sum_m b[m]) / M
#   grid = (row_tiles, vocab_tiles, M, K_tiles); M and K accumulate into the f32
#   VMEM scratch so the [M, T, N, V] stacked logits never touch HBM.  The bias is
#   pre-summed on the host and added exactly once at the final write.
# --------------------------------------------------------------------------
def _fused_avg_kernel(h_ref, w_ref, bsum_ref, o_ref, acc_ref, *, inv_m):
    m = pl.program_id(2)
    k = pl.program_id(3)

    @pl.when((m == 0) & (k == 0))
    def _():
        acc_ref[...] = jnp.zeros_like(acc_ref)

    acc_ref[...] += jnp.dot(h_ref[...], w_ref[...],
                            preferred_element_type=jnp.float32)

    @pl.when((m == pl.num_programs(2) - 1) & (k == pl.num_programs(3) - 1))
    def _():
        o_ref[...] = ((acc_ref[...] + bsum_ref[...]) * inv_m).astype(o_ref.dtype)


def fused_average_logits(h_stacked, w_stacked, b_sum):
    # h_stacked: [M, R, H] bf16, w_stacked: [M, H, V] bf16, b_sum: [1, V] f32 -> [R, V] f32
    M, R, H = h_stacked.shape
    V = w_stacked.shape[-1]
    tm, tn, tk = _pick_tiles(R, V, H)                # maximize tm: W is re-read per row tile
    grid = (R // tm, V // tn, M, H // tk)
    kernel = functools.partial(_fused_avg_kernel, inv_m=1.0 / M)
    return pl.pallas_call(
        kernel,
        out_shape=jax.ShapeDtypeStruct((R, V), jnp.float32),
        grid_spec=pltpu.PrefetchScalarGridSpec(
            num_scalar_prefetch=0,
            grid=grid,
            in_specs=[
                pl.BlockSpec((None, tm, tk), lambda i, j, m, k: (m, i, k)),
                pl.BlockSpec((None, tk, tn), lambda i, j, m, k: (m, k, j)),
                pl.BlockSpec((1, tn), lambda i, j, m, k: (0, j)),
            ],
            out_specs=pl.BlockSpec((tm, tn), lambda i, j, m, k: (i, j)),
            scratch_shapes=[pltpu.VMEM((tm, tn), jnp.float32)],
        ),
        compiler_params=pltpu.CompilerParams(
            dimension_semantics=("parallel", "parallel", "arbitrary", "arbitrary"),
            vmem_limit_bytes=_vmem_limit_bytes(),
        ),
    )(h_stacked, w_stacked, b_sum)


# --------------------------------------------------------------------------
# Pallas kernel 3: get_final_pred, method == 'max'
#   Input already in [M, N, T, V] layout (no host transpose of the big tensor).
#   Per sentence: ids = first-argmax of raw logits per (model, t); psum = sum_m softmax;
#   score[a] = sum_{t,v} onehot[a] * psum  (O(M*T*V)); emit raw logits of best model.
#   Softmax uses exact division so model selection matches an exact-softmax reference.
# --------------------------------------------------------------------------
# TODO(synk): for realistic vocab (e.g. V=32k) this kernel should be V-tiled with an
# online softmax / running-argmax recurrence (and ideally fused with the decoder
# matmul like the 'average' path); the current block loads the full (M, T, V) slab.
def _max_select_kernel(x_ref, o_ref, *, n_models, vocab):
    x = x_ref[...]                                           # [M, T, V] f32 (N squeezed)
    iota_v = jax.lax.broadcasted_iota(jnp.int32, x.shape, 2)
    xmax = jnp.max(x, axis=-1, keepdims=True)                # [M, T, 1]
    # first-argmax token ids from RAW logits (softmax monotone => same argmax)
    ids = jnp.min(jnp.where(x == xmax, iota_v, vocab), axis=-1, keepdims=True)  # [M,T,1]
    onehot = (iota_v == ids).astype(jnp.float32)             # [A=M, T, V]

    # softmax probabilities summed over models (exact division: stable selection)
    e = jnp.exp(x - xmax)
    p = e / jnp.sum(e, axis=-1, keepdims=True)
    psum = jnp.sum(p, axis=0)                                # [T, V]

    # score[a] ∝ sum_{t,v} onehot[a,t,v] * psum[t,v]   (no [A,M,T,V] blowup)
    score = jnp.sum(jnp.sum(onehot * psum[None, :, :], axis=2), axis=1,
                    keepdims=True)                           # [A, 1]

    # first-argmax over candidate models
    iota_a = jax.lax.broadcasted_iota(jnp.int32, score.shape, 0)
    smax = jnp.max(score, axis=0, keepdims=True)
    sel = jnp.min(jnp.where(score == smax, iota_a, n_models), axis=0,
                  keepdims=True)                             # [1, 1]
    # Masked reduce kept (instead of a dynamic first-axis gather of the selected
    # model) for robust lowering; M is small so this is one cheap extra VPU pass.
    onehot_m = (iota_a == sel).astype(x.dtype)               # [A, 1]
    o_ref[...] = jnp.sum(x * onehot_m[:, :, None], axis=0)   # [T, V]


def ensemble_max_select(stacked_mntv):
    # stacked: [M, N, T, V] f32 -> [N, T, V]  (per-sentence selected raw logits)
    M, N, T, V = stacked_mntv.shape
    kernel = functools.partial(_max_select_kernel, n_models=M, vocab=V)
    return pl.pallas_call(
        kernel,
        out_shape=jax.ShapeDtypeStruct((N, T, V), jnp.float32),
        grid_spec=pltpu.PrefetchScalarGridSpec(
            num_scalar_prefetch=0,
            grid=(N,),
            in_specs=[pl.BlockSpec((M, None, T, V), lambda n: (0, n, 0, 0))],
            out_specs=pl.BlockSpec((None, T, V), lambda n: (n, 0, 0)),
        ),
        compiler_params=pltpu.CompilerParams(
            dimension_semantics=("parallel",),
            vmem_limit_bytes=_vmem_limit_bytes(),
        ),
    )(stacked_mntv)


# --------------------------------------------------------------------------
# Module wrapper (glue in plain JAX)
# --------------------------------------------------------------------------
class TriangSeq2SeqPallas:
    """Pallas port of TriangSeq2Seq.forward (inference path, criterion=None)."""

    def __init__(self, cfg, model_params):
        self.cfg = dict(cfg)
        self.alpha = cfg['tri']['alpha']
        self.method = cfg['tri']['method']
        self.output_dim = cfg['seq2seq']['fr_DIM']
        self.num_model = len(model_params)
        self.model_params = model_params

    def _features(self, batch, layout, model_indices=None):
        """Synthetic submodel decoder features (plain-JAX glue; matmul is in Pallas).

        layout='tn': rows ordered (t, n)  -> output reshapes straight to [T, N, V].
        layout='nt': rows ordered (n, t)  -> 'max' kernel reads [M, N, T, V] without
                     a big host transpose of the stacked logits.
        """
        # TODO(synk): tanh(ctx + pos) could be fused into the matmul kernels as a
        # prologue (pass ctx/pos and build the h tile in-kernel); kept in plain JAX
        # since the real submodels are opaque external nn.Modules.
        trg, _ = batch['fr']
        T, N = trg.shape
        if model_indices is None:
            model_indices = range(self.num_model)
        hs, ws, bs = [], [], []
        for i in model_indices:
            params = self.model_params[i]
            src = batch[f'model_{i}'][0]                     # [S, N] int tokens
            emb = params['emb'][src]                         # [S, N, H]
            ctx = jnp.mean(emb, axis=0)                      # [N, H]
            if layout == 'tn':
                h = jnp.tanh(ctx[None, :, :] + params['pos'][:, None, :])   # [T, N, H]
            else:
                h = jnp.tanh(ctx[:, None, :] + params['pos'][None, :, :])   # [N, T, H]
            hs.append(h.reshape(T * N, -1).astype(jnp.bfloat16))
            ws.append(params['W'].astype(jnp.bfloat16))
            bs.append(params['b'].reshape(1, -1).astype(jnp.float32))
        return (jnp.stack(hs, 0), jnp.stack(ws, 0), jnp.stack(bs, 0), T, N)

    def forward(self, batch, model_cfg=None, criterion=None, teacher_forcing_ratio=0.5):
        # TODO(synk): the criterion branch (compute_submodels_loss /
        # compute_final_pred_loss) depends on an external `criterion` callable and
        # per-submodel training losses; only the inference path (criterion=None) is
        # implemented here.
        V = self.output_dim
        if self.method == 'average':
            h, w, b, T, N = self._features(batch, 'tn')
            b_sum = jnp.sum(b, axis=0)                       # [1, V], pre-summed bias
            mean_flat = fused_average_logits(h, w, b_sum)    # [T*N, V], no HBM round trip
            return (mean_flat.reshape(T, N, V), None)
        elif self.method == 'max':
            h, w, b, T, N = self._features(batch, 'nt')
            logits = submodel_logits(h, w, b)                # [M, N*T, V] f32
            stacked = logits.reshape(self.num_model, N, T, V)
            out_ntv = ensemble_max_select(stacked)           # [N, T, V]
            return (jnp.transpose(out_ntv, (1, 0, 2)), None) # [T, N, V] (small transpose)
        else:
            # single-model path: only decode model 0 (skip the other M-1 submodels)
            h, w, b, T, N = self._features(batch, 'tn', model_indices=[0])
            logits = submodel_logits(h, w, b)                # [1, T*N, V]
            return (logits[0].reshape(T, N, V), None)


# --------------------------------------------------------------------------
# Pure-JAX references for verification
# --------------------------------------------------------------------------
def _ref_stacked(model_params, batch):
    trg, _ = batch['fr']
    outs = []
    for i, params in enumerate(model_params):
        src = batch[f'model_{i}'][0]
        emb = params['emb'][src]
        ctx = jnp.mean(emb, axis=0)
        h = jnp.tanh(ctx[None, :, :] + params['pos'][:, None, :])        # [T, N, H]
        outs.append(jnp.dot(h, params['W'],
                            precision=jax.lax.Precision.HIGHEST) + params['b'])
    return jnp.stack(outs, axis=0)  # [M, T, N, V]


def _ref_max(stacked):
    # stacked: [M, T, N, V] -> [T, N, V] (selected model's raw logits per sentence)
    M, T, N, V = stacked.shape
    p = jax.nn.softmax(stacked, axis=-1)
    ids = jnp.argmax(p, axis=-1)                               # [M, T, N]
    oh = jax.nn.one_hot(ids, V, dtype=jnp.float32)             # [A, T, N, V]
    score = jnp.einsum('atnv,mtnv->na', oh, p)                 # [N, A] (∝ mean over m,t)
    sel = jnp.argmax(score, axis=-1)                           # [N]
    return jnp.stack([stacked[sel[n], :, n, :] for n in range(N)], axis=1)


if __name__ == "__main__":
    # Small but (8,128)-aligned shapes: lane dim V multiple of 128, sublane dims mult. of 8.
    M = 3            # number of submodels
    S = 8            # src len
    T = 8            # trg len
    N = 8            # batch
    H = 128          # hidden dim
    V = 256          # output vocab dim (cfg['seq2seq']['fr_DIM'])
    SRC_VOCAB = 16

    key = jax.random.PRNGKey(0)
    keys = jax.random.split(key, 4 * M + 2)
    model_params = []
    for i in range(M):
        k0, k1, k2, k3 = keys[4 * i:4 * i + 4]
        model_params.append(dict(
            emb=0.1 * jax.random.normal(k0, (SRC_VOCAB, H), jnp.float32),
            pos=0.1 * jax.random.normal(k1, (T, H), jnp.float32),
            W=0.1 * jax.random.normal(k2, (H, V), jnp.float32),
            b=0.1 * jax.random.normal(k3, (V,), jnp.float32),
        ))

    src = jax.random.randint(keys[-2], (S, N), 0, SRC_VOCAB)
    trg = jax.random.randint(keys[-1], (T, N), 0, V)
    src_len = jnp.full((N,), S, jnp.int32)
    trg_len = jnp.full((N,), T, jnp.int32)
    batch = {f'model_{i}': (src, src_len, trg, trg_len) for i in range(M)}
    batch['fr'] = (trg, trg_len)

    cfg = {
        'model_id': 'demo',
        'save_dir': '/tmp',
        'seq2seq': {'fr_DIM': V},
        'tri': {'alpha': 0.5, 'method': 'average', 'is_train_backbone': False},
    }

    stacked_ref = _ref_stacked(model_params, batch)            # [M, T, N, V] f32

    # ---- method = 'average' (fused mean, bf16 operands, no stacked-logits HBM round trip) ----
    model_avg = TriangSeq2SeqPallas(cfg, model_params)
    final_avg, _ = model_avg.forward(batch)
    final_avg = jax.block_until_ready(final_avg)
    ref_avg = jnp.mean(stacked_ref, axis=0)
    np.testing.assert_allclose(np.asarray(final_avg), np.asarray(ref_avg),
                               rtol=3e-3, atol=3e-3)

    # ---- method = 'max' ----
    cfg_max = {**cfg, 'tri': {**cfg['tri'], 'method': 'max'}}
    model_max = TriangSeq2SeqPallas(cfg_max, model_params)
    final_max, _ = model_max.forward(batch)
    final_max = jax.block_until_ready(final_max)
    # (a) Pallas stacked logits match the f32 reference within bf16-matmul tolerance.
    h_nt, w_nt, b_nt, _, _ = model_max._features(batch, 'nt')
    logits_k = jax.block_until_ready(submodel_logits(h_nt, w_nt, b_nt))   # [M, N*T, V]
    stacked_k_tn = jnp.transpose(logits_k.reshape(M, N, T, V), (0, 2, 1, 3))  # [M,T,N,V]
    np.testing.assert_allclose(np.asarray(stacked_k_tn), np.asarray(stacked_ref),
                               rtol=3e-3, atol=3e-3)
    # (b) The ensemble max-selection matches the pure-JAX selection on the SAME logits
    #     (selected model's raw logits are copied exactly).
    ref_sel = _ref_max(stacked_k_tn)
    np.testing.assert_allclose(np.asarray(final_max), np.asarray(ref_sel),
                               rtol=1e-6, atol=1e-6)

    # ---- default method (single submodel) ----
    cfg_one = {**cfg, 'tri': {**cfg['tri'], 'method': 'single'}}
    model_one = TriangSeq2SeqPallas(cfg_one, model_params)
    final_one, _ = model_one.forward(batch)
    final_one = jax.block_until_ready(final_one)
    np.testing.assert_allclose(np.asarray(final_one), np.asarray(stacked_ref[0]),
                               rtol=3e-3, atol=3e-3)

    print("KERNEL_OK")
</pallas_src>

<mosaic_0001>
module attributes {stable_mosaic.version = 11 : i64} {
  func.func @_fused_avg_kernel(%arg0: i32, %arg1: i32, %arg2: i32, %arg3: i32, %arg4: memref<1x64x128xbf16, #tpu.memory_space<vmem>>, %arg5: memref<1x128x256xbf16, #tpu.memory_space<vmem>>, %arg6: memref<1x256xf32, #tpu.memory_space<vmem>>, %arg7: memref<64x256xf32, #tpu.memory_space<vmem>>, %arg8: memref<64x256xf32, #tpu.memory_space<vmem>>) attributes {dimension_semantics = [#tpu.dimension_semantics<parallel>, #tpu.dimension_semantics<parallel>, #tpu.dimension_semantics<arbitrary>, #tpu.dimension_semantics<arbitrary>], iteration_bounds = array<i64: 1, 1, 3, 1>, scalar_prefetch = 0 : i64, scratch_operands = 1 : i64, tpu.core_type = #tpu.core_type<tc>, window_params = [{transform_indices = @transform_0, window_bounds = array<i64: 1, 64, 128>}, {transform_indices = @transform_1, window_bounds = array<i64: 1, 128, 256>}, {transform_indices = @transform_2, window_bounds = array<i64: 1, 256>}, {transform_indices = @transform_3, window_bounds = array<i64: 64, 256>}]} {
    %c0_i32 = arith.constant 0 : i32
    %0 = arith.cmpi eq, %arg2, %c0_i32 : i32
    %c0_i32_0 = arith.constant 0 : i32
    %1 = arith.cmpi eq, %arg3, %c0_i32_0 : i32
    %2 = arith.andi %0, %1 : i1
    %3 = arith.extui %2 : i1 to i32
    %c0_i32_1 = arith.constant 0 : i32
    %4 = arith.cmpi ne, %3, %c0_i32_1 : i32
    scf.if %4 {
      %cst_13 = arith.constant 0.000000e+00 : f32
      %18 = vector.broadcast %cst_13 : f32 to vector<64x256xf32>
      %c0_14 = arith.constant 0 : index
      %c0_15 = arith.constant 0 : index
      %19 = vector.load %arg8[%c0_14, %c0_15] : memref<64x256xf32, #tpu.memory_space<vmem>>, vector<64x256xf32>
      tpu.vector_store %arg8[%c0_14, %c0_15], %18 {strides = array<i32>} : memref<64x256xf32, #tpu.memory_space<vmem>>, vector<64x256xf32>,
    } else {
    }
    %c0 = arith.constant 0 : index
    %c0_2 = arith.constant 0 : index
    %5 = vector.load %arg8[%c0, %c0_2] : memref<64x256xf32, #tpu.memory_space<vmem>>, vector<64x256xf32>
    %c0_3 = arith.constant 0 : index
    %c0_4 = arith.constant 0 : index
    %c0_5 = arith.constant 0 : index
    %6 = vector.load %arg4[%c0_3, %c0_4, %c0_5] : memref<1x64x128xbf16, #tpu.memory_space<vmem>>, vector<1x64x128xbf16>
    %7 = vector.shape_cast %6 : vector<1x64x128xbf16> to vector<64x128xbf16>
    %c0_6 = arith.constant 0 : index
    %c0_7 = arith.constant 0 : index
    %c0_8 = arith.constant 0 : index
    %8 = vector.load %arg5[%c0_6, %c0_7, %c0_8] : memref<1x128x256xbf16, #tpu.memory_space<vmem>>, vector<1x128x256xbf16>
    %9 = vector.shape_cast %8 : vector<1x128x256xbf16> to vector<128x256xbf16>
    %cst = arith.constant dense<0.000000e+00> : vector<64x256xf32>
    %10 = tpu.matmul %7, %9, %cst {dimension_numbers = #tpu.dot_dimension_numbers<[1], [0], [0], [1], [0, 0, 1, 1], [], []>} : vector<64x128xbf16>, vector<128x256xbf16>, vector<64x256xf32> -> vector<64x256xf32>
    %11 = arith.addf %5, %10 : vector<64x256xf32>
    %c0_9 = arith.constant 0 : index
    %c0_10 = arith.constant 0 : index
    %12 = vector.load %arg8[%c0_9, %c0_10] : memref<64x256xf32, #tpu.memory_space<vmem>>, vector<64x256xf32>
    tpu.vector_store %arg8[%c0_9, %c0_10], %11 {strides = array<i32>} : memref<64x256xf32, #tpu.memory_space<vmem>>, vector<64x256xf32>,
    %c2_i32 = arith.constant 2 : i32
    %13 = arith.cmpi eq, %arg2, %c2_i32 : i32
    %c0_i32_11 = arith.constant 0 : i32
    %14 = arith.cmpi eq, %arg3, %c0_i32_11 : i32
    %15 = arith.andi %13, %14 : i1
    %16 = arith.extui %15 : i1 to i32
    %c0_i32_12 = arith.constant 0 : i32
    %17 = arith.cmpi ne, %16, %c0_i32_12 : i32
    scf.if %17 {
      %c0_13 = arith.constant 0 : index
      %c0_14 = arith.constant 0 : index
      %18 = vector.load %arg8[%c0_13, %c0_14] : memref<64x256xf32, #tpu.memory_space<vmem>>, vector<64x256xf32>
      %c0_15 = arith.constant 0 : index
      %c0_16 = arith.constant 0 : index
      %19 = vector.load %arg6[%c0_15, %c0_16] : memref<1x256xf32, #tpu.memory_space<vmem>>, vector<1x256xf32>
      %20 = vector.broadcast %19 : vector<1x256xf32> to vector<64x256xf32>
      %21 = arith.addf %18, %20 : vector<64x256xf32>
      %cst_17 = arith.constant 0.333333343 : f32
      %22 = vector.broadcast %cst_17 : f32 to vector<64x256xf32>
      %23 = arith.mulf %21, %22 : vector<64x256xf32>
      %c0_18 = arith.constant 0 : index
      %c0_19 = arith.constant 0 : index
      %24 = vector.load %arg7[%c0_18, %c0_19] : memref<64x256xf32, #tpu.memory_space<vmem>>, vector<64x256xf32>
      tpu.vector_store %arg7[%c0_18, %c0_19], %23 {strides = array<i32>} : memref<64x256xf32, #tpu.memory_space<vmem>>, vector<64x256xf32>,
    } else {
    }
    return
  }
  func.func @transform_0(%arg0: i32, %arg1: i32, %arg2: i32, %arg3: i32) -> (i32, i32, i32) {
    %c0_i32 = arith.constant 0 : i32
    return %arg2, %arg0, %arg3 : i32, i32, i32
  }
  func.func @transform_1(%arg0: i32, %arg1: i32, %arg2: i32, %arg3: i32) -> (i32, i32, i32) {
    %c0_i32 = arith.constant 0 : i32
    return %arg2, %arg3, %arg1 : i32, i32, i32
  }
  func.func @transform_2(%arg0: i32, %arg1: i32, %arg2: i32, %arg3: i32) -> (i32, i32) {
    %c0_i32 = arith.constant 0 : i32
    %c0_i32_0 = arith.constant 0 : i32
    return %c0_i32, %arg1 : i32, i32
  }
  func.func @transform_3(%arg0: i32, %arg1: i32, %arg2: i32, %arg3: i32) -> (i32, i32) {
    %c0_i32 = arith.constant 0 : i32
    return %arg0, %arg1 : i32, i32
  }
}

</mosaic_0001>

<bundles_post_ra>
// kernel: tpu_custom_call.1
= control target key start
LH: loop header
LB: loop body
LE: loop exit
PB: predicated region body
PF: predicated region fallthrough
CT: control target
= control target key end

     0   :  { %s1367_s0 = inlined_call_operand.hbm [shape: bf16[3,64,128], index: 0, kind: input, shape index: {}]   ;;  %s1368_s1 = inlined_call_operand.hbm [shape: bf16[3,128,256], index: 1, kind: input, shape index: {}]   ;;  %s1369_s2 = inlined_call_operand.hbm [shape: f32[1,256], index: 2, kind: input, shape index: {}]   ;;  %s1370_s3 = inlined_call_operand.hbm [shape: f32[64,256], index: 3, kind: output, shape index: {}]  }
   0x1   :  { %1371 = sst [smem:[#allocation14_spill]] %s1367_s0 }
   0x2   :  { %1372 = sst [smem:[#allocation15_spill]] %s1369_s2 }
   0x3   :  { %8 = vsyncpa [#allocation4], 0 }
   0x4   :  { %10 = vsyncpa [#allocation4 + $0x1], 0 }
   0x5   :  { %11 = vsyncpa [#allocation7], 0 }
   0x6   :  { %13 = vsyncpa [#allocation7 + $0x1], 0 }
   0x7   :  { %14 = vsyncpa [#allocation5], 0  ;;  %s1194_s12 = smov 0   ;;  %s1196_s13 = smov 0  }
   0x8   :  { %s1198_s14 = smov 0   ;;  %s1200_s15 = smov 0  }
   0x9   :  { %s1202_s16 = smov 0   ;;  %s1204_s17 = smov 0  }
   0xa LB: > { %s1223_s18 = sadd.s32 4294967295, %s1163_s17   ;;  %s57_s19 = sadd.s32 1, %s1151_s14  ;;  %s1163_s17 = sphi %s1204_s17, %s20_s17   ;;  %s1159_s16 = sphi %s1202_s16, %s1383_s16   ;;  %s1155_s15 = sphi %s1200_s15, %s1382_s15   ;;  %s1151_s14 = sphi %s1198_s14, %s1381_s14   ;;  %s1147_s13 = sphi %s1196_s13, %s1380_s13   ;;  %s1143_s12 = sphi %s1194_s12, %s1379_s12  }
   0xb   : > { %p64_p0 = scmp.ne.s32.totalorder %s1151_s14, %s1147_s13  ;;  %p65_p1 = scmp.eq.s32.totalorder %s1163_s17, 0 }
   0xc   : > { %p70_p2 = scmp.ne.s32.totalorder %s1147_s13, %s1143_s12  ;;  %p71_p3 = scmp.eq.s32.totalorder %s1223_s18, 0 }
   0xd   : > { %p1231_p4 = por %p65_p1, %p64_p0  ;;  %p759_p5 = scmp.ge.s32.totalorder %s1163_s17, 1 }
   0xe   : > { %p1238_p6 = por %p71_p3, %p70_p2  ;;  %p165_p7 = scmp.lt.s32.totalorder %s1163_s17, 4 }
   0xf   : > { %s1375_s2 = sld [smem:[#allocation15_spill]]  ;;  %s1165_s26 = smov [#allocation8]  }
  0x10   : > { %p1246_p8 = pnand %p759_p5, %p165_p7  ;;  %s181_s27 = sshll.u32 %s1165_s26, 4  ;;  %s182_s27 = int_to_ptr.vmem [resolvable:$true] %s181_s27 }
  0x11   : > { %p922_p10 = scmp.lt.s32.totalorder %s1163_s17, 3  ;;  %s38_s29 = sadd.s32 1, %s1159_s16 }
  0x12   : > { %p910_p9 = pneg %p1246_p8  ;;  %p40_p13 = scmp.ge.s32.totalorder %s38_s29, 3 }
  0x13   : > { %p1257_p12 = pnand %p922_p10, %p1231_p4  ;;  %s192_s30 = sand.u32 1, %s1151_s14  }
  0x14   : > { %p911_p11 = pnand %p910_p9, %p71_p3  ;;  %s858_s4 = sshll.u32 %s1159_s16, 5 }
  0x15   : > { %s179_s24 = sshll.u32 %s1375_s2, 4  ;;  %s1385_s29 = smov (%p40_p13, %s38_s29), 0  ;;  %s180_s24 = int_to_ptr.hbm [resolvable:$true] %s179_s24 }
  0x16   : > { %913 = dma.hbm_to_vmem [thread:$0]  (!%p911_p11), %s180_s24, 32, %s182_s27, [#allocation7]  }
  0x17   : > { %s762_s5 = sshll.u32 %s192_s30, 5  ;;  %s50_s6 = ssub.s32 %s1159_s16, %s1385_s29 }
  0x18   : > { %p55_p0 = scmp.eq.s32.totalorder %s50_s6, 0  ;;  %s1378_s0 = sld [smem:[#allocation14_spill]] }
  0x19   : > { %s196_s11 = scalar_lea.vmem [#allocation3], %s762_s5  ;;  %s193_s22 = scalar_lea.sflag [#allocation4], %s192_s30 }
  0x1a   : > { %s207_s12 = sshll.u32 %s196_s11, 4  ;;  %s1166_s23 = smov 64   ;;  %s208_s12 = int_to_ptr.vmem [resolvable:$true] %s207_s12 }
  0x1b   : > { %s1274_s20 = scalar_select %p55_p0, %s1151_s14, %s57_s19  }
  0x1c   : > { %s1167_s24 = smov 4   ;;  %s217_s26 = sand.u32 1, %s1163_s17  }
  0x1d   : > { %s765_s27 = sshll.u32 %s192_s30, 7  ;;  %s859_s6 = sshll.u32 %s1159_s16, 7 }
  0x1e   : > { %s204_s9 = scalar_lea.hbm %s1378_s0, %s858_s4  ;;  %s221_s2 = scalar_lea.vmem [#allocation6], %s765_s27 }
  0x1f   : > { %s205_s10 = sshll.u32 %s204_s9, 4  ;;  %s234_s7 = sshll.u32 %s221_s2, 4  ;;  %s206_s10 = int_to_ptr.hbm [resolvable:$true] %s205_s10  ;;  %s235_s7 = int_to_ptr.vmem [resolvable:$true] %s234_s7 }
  0x20   : > { %917 = dma.hbm_to_vmem [thread:$0]  (!%p1257_p12), %s206_s10, 512, %s208_s12, %s193_s22, %s1166_s23, %s1166_s23, %s1167_s24  }
  0x21   : > { %s231_s5 = scalar_lea.hbm %s1368_s1, %s859_s6  ;;  %s218_s9 = scalar_lea.sflag [#allocation7], %s217_s26 }
  0x22   : > { %s232_s19 = sshll.u32 %s231_s5, 4  ;;  %s1168_s11 = smov 128   ;;  %s233_s19 = int_to_ptr.hbm [resolvable:$true] %s232_s19 }
  0x23   : > { %s1169_s0 = smov 8   ;;  %246 = sbr.rel (%p1246_p8) target bundleno = 276 (0x114), region = 32 }
  0x24   : > { %920 = dma.hbm_to_vmem [thread:$0]  (!%p1257_p12), %s233_s19, 2048, %s235_s7, %s218_s9, %s1168_s11, %s1168_s11, %s1169_s0  }
  0x25   : > { %s248_s30 = sand.u32 (!%p1246_p8), 1, %s1147_s13  }
  0x26   : > { %s769_s10 = sshll.u32 (!%p1246_p8), %s248_s30, 5  ;;  %s249_s2 = scalar_lea.sflag (!%p1246_p8), [#allocation4], %s248_s30 }
  0x27   : > { %s1288_s12 = scalar_lea.vmem (!%p1246_p8), [#allocation3], %s769_s10 }
  0x28   : > { %1126 = dma.done.wait (%p1238_p6), %s249_s2, 512  }
  0x29   : > { %1128 = vsyncadd (%p1238_p6), %s249_s2, 4294966784  ;;  %s258_s22 = sand.u32 1, %s1223_s18   ;;  %s770_s28 = sshll.u32 %s248_s30, 7 }
  0x2a   : > { %s259_s0 = scalar_lea.sflag [#allocation7], %s258_s22  ;;  %s1295_s23 = scalar_lea.vmem [#allocation6], %s770_s28 }
  0x2b   : > { %1130 = dma.done.wait (%p1238_p6), %s259_s0, 2048  }
  0x2c   : > { %1132 = vsyncadd (%p1238_p6), %s259_s0, 4294965248 }
  0x2d   : > { %1134 = dma.done.wait (%p71_p3), [#allocation7], 32  }
  0x2e   : > { %1136 = vsyncadd (%p71_p3), [#allocation7], 4294967264  ;;  %p297_p1 = scmp.eq.s32.totalorder %s1155_s15, 0 }
  0x2f   : > { %v1170_v0 = vmov (%p297_p1), 0.0  }
  0x30   : > { %302 = sbr.rel (!%p297_p1) target bundleno = 64 (0x40), region = 48  ;;  %303 = vst [vmem:[#allocation2 + $0x30] sm:$0xff] (%p297_p1), %v1170_v0 }
  0x31   : > { %304 = vst [vmem:[#allocation2] sm:$0xff] (%p297_p1), %v1170_v0 }
  0x32   : > { %305 = vst [vmem:[#allocation2 + $0x58] sm:$0xff] (%p297_p1), %v1170_v0 }
  0x33   : > { %306 = vst [vmem:[#allocation2 + $0x18] sm:$0xff] (%p297_p1), %v1170_v0 }
  0x34   : > { %307 = vst [vmem:[#allocation2 + $0x50] sm:$0xff] (%p297_p1), %v1170_v0 }
  0x35   : > { %308 = vst [vmem:[#allocation2 + $0x68] sm:$0xff] %v1170_v0 }
  0x36   : > { %309 = vst [vmem:[#allocation2 + $0x8] sm:$0xff] %v1170_v0 }
  0x37   : > { %310 = vst [vmem:[#allocation2 + $0x48] sm:$0xff] %v1170_v0 }
  0x38   : > { %311 = vst [vmem:[#allocation2 + $0x40] sm:$0xff] %v1170_v0 }
  0x39   : > { %312 = vst [vmem:[#allocation2 + $0x20] sm:$0xff] %v1170_v0 }
  0x3a   : > { %313 = vst [vmem:[#allocation2 + $0x10] sm:$0xff] %v1170_v0 }
  0x3b   : > { %314 = vst [vmem:[#allocation2 + $0x38] sm:$0xff] %v1170_v0 }
  0x3c   : > { %315 = vst [vmem:[#allocation2 + $0x60] sm:$0xff] %v1170_v0 }
  0x3d   : > { %316 = vst [vmem:[#allocation2 + $0x70] sm:$0xff] %v1170_v0 }
  0x3e   : > { %317 = vst [vmem:[#allocation2 + $0x78] sm:$0xff] %v1170_v0 }
  0x3f   : > { %318 = vst [vmem:[#allocation2 + $0x28] sm:$0xff] %v1170_v0 }
  0x40 PF: > { %v847_v1 = vld [vmem:[%s1295_s23 + $0x70] sm:$0xf]  ;;  %v880_v2 = vld [vmem:[%s1295_s23 + $0x74] sm:$0xf0]  ;;  %v879_v3 = vld [vmem:[%s1295_s23 + $0x74] sm:$0xf] }
  0x41   : > { %v848_v4 = vor.u32 %v880_v2, %v847_v1  ;;  %v849_v5 = vld [vmem:[%s1295_s23 + $0x78] sm:$0xf0]  ;;  %v839_v6 = vld [vmem:[%s1295_s23 + $0x60] sm:$0xf]  ;;  %v878_v7 = vld [vmem:[%s1295_s23 + $0x64] sm:$0xf0] }
  0x42   : > { %v852_v8 = vor.u32 %v879_v3, %v849_v5  ;;  %v877_v9 = vld [vmem:[%s1295_s23 + $0x64] sm:$0xf]  ;;  %v841_v10 = vld [vmem:[%s1295_s23 + $0x68] sm:$0xf0]  ;;  %v840_v11 = vor.u32 %v878_v7, %v839_v6  ;;  %v831_v13 = vld [vmem:[%s1295_s23 + $0x50] sm:$0xf] }
  0x43   : > { %463 = vmatpush.bf16.msra.mxu0 %v848_v4  ;;  %882 = vmatpush.bf16.msra.mxu2 %v848_v4  ;;  %v844_v12 = vor.u32 %v877_v9, %v841_v10  ;;  %v876_v14 = vld [vmem:[%s1295_s23 + $0x54] sm:$0xf0]  ;;  %v875_v15 = vld [vmem:[%s1295_s23 + $0x54] sm:$0xf]  ;;  %v833_v16 = vld [vmem:[%s1295_s23 + $0x58] sm:$0xf0] }
  0x44   : > { %492 = vmatpush.bf16.msra.mxu1 %v852_v8  ;;  %890 = vmatpush.bf16.msra.mxu3 %v852_v8  ;;  %v832_v17 = vor.u32 %v876_v14, %v831_v13  ;;  %v836_v18 = vor.u32 %v875_v15, %v833_v16  ;;  %v823_v19 = vld [vmem:[%s1295_s23 + $0x40] sm:$0xf]  ;;  %v874_v20 = vld [vmem:[%s1295_s23 + $0x44] sm:$0xf0]  ;;  %v873_v21 = vld [vmem:[%s1295_s23 + $0x44] sm:$0xf] }
  0x45   : > { %v825_v22 = vld [vmem:[%s1295_s23 + $0x48] sm:$0xf0]  ;;  %v824_v23 = vor.u32 %v874_v20, %v823_v19  ;;  %v815_v25 = vld [vmem:[%s1295_s23 + $0x30] sm:$0xf]  ;;  %v872_v26 = vld [vmem:[%s1295_s23 + $0x34] sm:$0xf0] }
  0x46   : > { %v828_v24 = vor.u32 %v873_v21, %v825_v22  ;;  %v871_v27 = vld [vmem:[%s1295_s23 + $0x34] sm:$0xf]  ;;  %v817_v28 = vld [vmem:[%s1295_s23 + $0x38] sm:$0xf0]  ;;  %v816_v29 = vor.u32 %v872_v26, %v815_v25  ;;  %v807_v31 = vld [vmem:[%s1295_s23 + $0x20] sm:$0xf] }
  0x47   : > { %464 = vmatpush.bf16.msra.mxu0 %v840_v11  ;;  %883 = vmatpush.bf16.msra.mxu2 %v840_v11  ;;  %v820_v30 = vor.u32 %v871_v27, %v817_v28  ;;  %v870_v32 = vld [vmem:[%s1295_s23 + $0x24] sm:$0xf0]  ;;  %v869_v33 = vld [vmem:[%s1295_s23 + $0x24] sm:$0xf]  ;;  %v809_v34 = vld [vmem:[%s1295_s23 + $0x28] sm:$0xf0] }
  0x48   : > { %493 = vmatpush.bf16.msra.mxu1 %v844_v12  ;;  %891 = vmatpush.bf16.msra.mxu3 %v844_v12  ;;  %v808_v35 = vor.u32 %v870_v32, %v807_v31  ;;  %v812_v36 = vor.u32 %v869_v33, %v809_v34  ;;  %v799_v37 = vld [vmem:[%s1295_s23 + $0x10] sm:$0xf]  ;;  %v868_v38 = vld [vmem:[%s1295_s23 + $0x14] sm:$0xf0]  ;;  %v867_v39 = vld [vmem:[%s1295_s23 + $0x14] sm:$0xf] }
  0x49   : > { %v801_v40 = vld [vmem:[%s1295_s23 + $0x18] sm:$0xf0]  ;;  %v800_v41 = vor.u32 %v868_v38, %v799_v37  ;;  %v791_v43 = vld [vmem:[%s1295_s23] sm:$0xf]  ;;  %v866_v44 = vld [vmem:[%s1295_s23 + $0x4] sm:$0xf0] }
  0x4a   : > { %v804_v42 = vor.u32 %v867_v39, %v801_v40  ;;  %v865_v45 = vld [vmem:[%s1295_s23 + $0x4] sm:$0xf]  ;;  %v793_v46 = vld [vmem:[%s1295_s23 + $0x8] sm:$0xf0]  ;;  %v792_v47 = vor.u32 %v866_v44, %v791_v43  ;;  %v863_v50 = vld [vmem:[%s1288_s12 + $0x10] sm:$0xff]  ;;  %p553_p2 = scmp.eq.s32.totalorder %s1155_s15, 2 }
  0x4b   : > { %465 = vmatpush.bf16.msra.mxu0 %v832_v17  ;;  %884 = vmatpush.bf16.msra.mxu2 %v832_v17  ;;  %v796_v48 = vor.u32 %v865_v45, %v793_v46  ;;  %v861_v49 = vld [vmem:[%s1288_s12] sm:$0xff]  ;;  %v862_v51 = vld [vmem:[%s1288_s12 + $0x8] sm:$0xff]  ;;  %v864_v52 = vld [vmem:[%s1288_s12 + $0x18] sm:$0xff] }
  0x4c   : > { %494 = vmatpush.bf16.msra.mxu1 %v836_v18  ;;  %892 = vmatpush.bf16.msra.mxu3 %v836_v18  ;;  %v319_v53 = vld [vmem:[#allocation2 + $0x30] sm:$0xff]  ;;  %v320_v54 = vld [vmem:[#allocation2] sm:$0xff]  ;;  %v321_v62 = vld [vmem:[#allocation2 + $0x58] sm:$0xff] }
  0x4d   : > { %v327_v59 = vld [vmem:[#allocation2 + $0x40] sm:$0xff]  ;;  %v322_v1 = vld [vmem:[#allocation2 + $0x18] sm:$0xff]  ;;  %v329_v7 = vld [vmem:[#allocation2 + $0x10] sm:$0xff] }
  0x4e   : > { %v328_v60 = vld [vmem:[#allocation2 + $0x20] sm:$0xff]  ;;  %v330_v8 = vld [vmem:[#allocation2 + $0x38] sm:$0xff]  ;;  %v323_v10 = vld [vmem:[#allocation2 + $0x50] sm:$0xff] }
  0x4f   : > { %466 = vmatpush.bf16.msra.mxu0 %v824_v23  ;;  %885 = vmatpush.bf16.msra.mxu2 %v824_v23  ;;  %v324_v13 = vld [vmem:[#allocation2 + $0x68] sm:$0xff]  ;;  %v331_v19 = vld [vmem:[#allocation2 + $0x60] sm:$0xff]  ;;  %v332_v20 = vld [vmem:[#allocation2 + $0x70] sm:$0xff] }
  0x50   : > { %495 = vmatpush.bf16.msra.mxu1 %v828_v24  ;;  %893 = vmatpush.bf16.msra.mxu3 %v828_v24  ;;  %v325_v22 = vld [vmem:[#allocation2 + $0x8] sm:$0xff]  ;;  %v333_v31 = vld [vmem:[#allocation2 + $0x78] sm:$0xff]  ;;  %v574_v38 = vld [vmem:[#allocation8] sm:$0x3] (%p553_p2) }
  0x51   : > { %v326_v25 = vld [vmem:[#allocation2 + $0x48] sm:$0xff]  ;;  %v576_v40 = vperm.slane (%p553_p2), %v574_v38, 0 }
  0x52   : > { %v334_v32 = vld [vmem:[#allocation2 + $0x28] sm:$0xff] }
  0x53   : > { %467 = vmatpush.bf16.msra.mxu0 %v816_v29  ;;  %886 = vmatpush.bf16.msra.mxu2 %v816_v29 }
  0x54   : > { %496 = vmatpush.bf16.msra.mxu1 %v820_v30  ;;  %894 = vmatpush.bf16.msra.mxu3 %v820_v30 }
  0x57   : > { %468 = vmatpush.bf16.msra.mxu0 %v808_v35  ;;  %887 = vmatpush.bf16.msra.mxu2 %v808_v35 }
  0x58   : > { %497 = vmatpush.bf16.msra.mxu1 %v812_v36  ;;  %895 = vmatpush.bf16.msra.mxu3 %v812_v36 }
  0x5b   : > { %469 = vmatpush.bf16.msra.mxu0 %v800_v41  ;;  %888 = vmatpush.bf16.msra.mxu2 %v800_v41  ;;  %v577_v41 = vperm.slane (%p553_p2), %v574_v38, 1 }
  0x5c   : > { %498 = vmatpush.bf16.msra.mxu1 %v804_v42  ;;  %896 = vmatpush.bf16.msra.mxu3 %v804_v42 }
  0x5f   : > { %470 = vmatpush.bf16.msra.mxu0 %v792_v47  ;;  %889 = vmatpush.bf16.msra.mxu2 %v792_v47 }
  0x60   : > { %499 = vmatpush.bf16.msra.mxu1 %v796_v48  ;;  %897 = vmatpush.bf16.msra.mxu3 %v796_v48 }
  0x62   : > { %471 = vmatmul.bf16.vlgmr.msra.gmra.mxu0 %v861_v49  ;;  %481 = vmatmul.bf16.vlgmr.msra.gmra.mxu2 %v863_v50 }
  0x63   : > { %500 = vmatmul.bf16.vlgmr.msra.gmra.mxu1 %v861_v49  ;;  %510 = vmatmul.bf16.vlgmr.msra.gmra.mxu3 %v863_v50 }
  0x72   : > { %476 = vmatmul.bf16.gmra.mxu0 %v862_v51  ;;  %486 = vmatmul.bf16.gmra.mxu2 %v864_v52 }
  0x73   : > { %505 = vmatmul.bf16.gmra.mxu1 %v862_v51  ;;  %515 = vmatmul.bf16.gmra.mxu3 %v864_v52 }
  0xdf   : > { %v472_v55 = vpop.f32.mrf.mxu0 }
  0xe0   : > { %v521_v56 = vadd.f32 %v472_v55, %v319_v53  ;;  %v501_v57 = vpop.f32.mrf.mxu1 }
  0xe1   : > { %v522_v58 = vadd.f32 %v501_v57, %v320_v54 }
  0xe2   : > { %537 = vst [vmem:[#allocation2 + $0x30] sm:$0xff] %v521_v56 }
  0xe3   : > { %538 = vst [vmem:[#allocation2] sm:$0xff] %v522_v58 }
  0xe5   : > { %v482_v61 = vpop.f32.mrf.mxu2 }
  0xe6   : > { %v529_v63 = vadd.f32 %v482_v61, %v327_v59  ;;  %v511_v0 = vpop.f32.mrf.mxu3 }
  0xe7   : > { %v530_v2 = vadd.f32 %v511_v0, %v328_v60  ;;  %v474_v3 = vpop.f32.mrf.mxu0 }
  0xe8   : > { %545 = vst [vmem:[#allocation2 + $0x40] sm:$0xff] %v529_v63  ;;  %v523_v4 = vadd.f32 %v474_v3, %v321_v62  ;;  %v503_v5 = vpop.f32.mrf.mxu1 }
  0xe9   : > { %546 = vst [vmem:[#allocation2 + $0x20] sm:$0xff] %v530_v2  ;;  %v524_v6 = vadd.f32 %v503_v5, %v322_v1  ;;  %v558_v37 = vld [vmem:[#allocation2 + $0x30] sm:$0xff] (%p553_p2) }
  0xea   : > { %539 = vst [vmem:[#allocation2 + $0x58] sm:$0xff] %v523_v4  ;;  %v559_v39 = vld [vmem:[#allocation2] sm:$0xff] (%p553_p2)  ;;  %v580_v47 = vadd.f32 (%p553_p2), %v576_v40, %v558_v37 }
  0xeb   : > { %540 = vst [vmem:[#allocation2 + $0x18] sm:$0xff] %v524_v6  ;;  %v581_v48 = vadd.f32 (%p553_p2), %v577_v41, %v559_v39 }
  0xec   : > { %v596_v56 = vmul.f32 (%p553_p2), 0.33333334, %v580_v47 }
  0xed   : > { %v484_v9 = vpop.f32.mrf.mxu2  ;;  %v597_v57 = vmul.f32 (%p553_p2), 0.33333334, %v581_v48 }
  0xee   : > { %v531_v11 = vadd.f32 %v484_v9, %v329_v7  ;;  %v513_v12 = vpop.f32.mrf.mxu3  ;;  %612 = vst [vmem:[#allocation9] sm:$0xff] (%p553_p2), %v596_v56 }
  0xef   : > { %v532_v14 = vadd.f32 %v513_v12, %v330_v8  ;;  %v477_v15 = vpop.f32.mrf.mxu0  ;;  %v566_v54 = vld [vmem:[#allocation2 + $0x40] sm:$0xff] (%p553_p2)  ;;  %613 = vst [vmem:[#allocation9 + $0x8] sm:$0xff] (%p553_p2), %v597_v57 }
  0xf0   : > { %547 = vst [vmem:[#allocation2 + $0x10] sm:$0xff] %v531_v11  ;;  %v525_v16 = vadd.f32 %v477_v15, %v323_v10  ;;  %v506_v17 = vpop.f32.mrf.mxu1  ;;  %v567_v55 = vld [vmem:[#allocation2 + $0x20] sm:$0xff] (%p553_p2)  ;;  %v588_v0 = vadd.f32 (%p553_p2), %v576_v40, %v566_v54 }
  0xf1   : > { %548 = vst [vmem:[#allocation2 + $0x38] sm:$0xff] %v532_v14  ;;  %v526_v18 = vadd.f32 %v506_v17, %v324_v13  ;;  %v560_v42 = vld [vmem:[#allocation2 + $0x58] sm:$0xff] (%p553_p2)  ;;  %v589_v3 = vadd.f32 (%p553_p2), %v577_v41, %v567_v55 }
  0xf2   : > { %541 = vst [vmem:[#allocation2 + $0x50] sm:$0xff] %v525_v16  ;;  %v561_v43 = vld [vmem:[#allocation2 + $0x18] sm:$0xff] (%p553_p2)  ;;  %v582_v49 = vadd.f32 (%p553_p2), %v576_v40, %v560_v42  ;;  %v604_v11 = vmul.f32 (%p553_p2), 0.33333334, %v588_v0 }
  0xf3   : > { %542 = vst [vmem:[#allocation2 + $0x68] sm:$0xff] %v526_v18  ;;  %v583_v50 = vadd.f32 (%p553_p2), %v577_v41, %v561_v43  ;;  %v605_v14 = vmul.f32 (%p553_p2), 0.33333334, %v589_v3 }
  0xf4   : > { %v598_v58 = vmul.f32 (%p553_p2), 0.33333334, %v582_v49  ;;  %620 = vst [vmem:[#allocation9 + $0x40] sm:$0xff] (%p553_p2), %v604_v11 }
  0xf5   : > { %v487_v21 = vpop.f32.mrf.mxu2  ;;  %v599_v60 = vmul.f32 (%p553_p2), 0.33333334, %v583_v50  ;;  %621 = vst [vmem:[#allocation9 + $0x48] sm:$0xff] (%p553_p2), %v605_v14 }
  0xf6   : > { %v533_v23 = vadd.f32 %v487_v21, %v331_v19  ;;  %v516_v24 = vpop.f32.mrf.mxu3  ;;  %614 = vst [vmem:[#allocation9 + $0x10] sm:$0xff] (%p553_p2), %v598_v58 }
  0xf7   : > { %v534_v26 = vadd.f32 %v516_v24, %v332_v20  ;;  %v479_v27 = vpop.f32.mrf.mxu0  ;;  %v568_v62 = vld [vmem:[#allocation2 + $0x10] sm:$0xff] (%p553_p2)  ;;  %615 = vst [vmem:[#allocation9 + $0x18] sm:$0xff] (%p553_p2), %v599_v60 }
  0xf8   : > { %549 = vst [vmem:[#allocation2 + $0x60] sm:$0xff] %v533_v23  ;;  %v527_v28 = vadd.f32 %v479_v27, %v325_v22  ;;  %v508_v29 = vpop.f32.mrf.mxu1  ;;  %v569_v1 = vld [vmem:[#allocation2 + $0x38] sm:$0xff] (%p553_p2)  ;;  %v590_v6 = vadd.f32 (%p553_p2), %v576_v40, %v568_v62 }
  0xf9   : > { %550 = vst [vmem:[#allocation2 + $0x70] sm:$0xff] %v534_v26  ;;  %v528_v30 = vadd.f32 %v508_v29, %v326_v25  ;;  %v562_v44 = vld [vmem:[#allocation2 + $0x50] sm:$0xff] (%p553_p2)  ;;  %v591_v9 = vadd.f32 (%p553_p2), %v577_v41, %v569_v1 }
  0xfa   : > { %543 = vst [vmem:[#allocation2 + $0x8] sm:$0xff] %v527_v28  ;;  %v563_v45 = vld [vmem:[#allocation2 + $0x68] sm:$0xff] (%p553_p2)  ;;  %v584_v52 = vadd.f32 (%p553_p2), %v576_v40, %v562_v44  ;;  %v606_v16 = vmul.f32 (%p553_p2), 0.33333334, %v590_v6 }
  0xfb   : > { %544 = vst [vmem:[#allocation2 + $0x48] sm:$0xff] %v528_v30  ;;  %v585_v53 = vadd.f32 (%p553_p2), %v577_v41, %v563_v45  ;;  %v607_v18 = vmul.f32 (%p553_p2), 0.33333334, %v591_v9 }
  0xfc   : > { %v600_v63 = vmul.f32 (%p553_p2), 0.33333334, %v584_v52  ;;  %622 = vst [vmem:[#allocation9 + $0x50] sm:$0xff] (%p553_p2), %v606_v16 }
  0xfd   : > { %v489_v33 = vpop.f32.mrf.mxu2  ;;  %557 = sbr.rel (!%p553_p2) target bundleno = 270 (0x10e), region = 52  ;;  %v601_v2 = vmul.f32 (%p553_p2), 0.33333334, %v585_v53  ;;  %623 = vst [vmem:[#allocation9 + $0x58] sm:$0xff] (%p553_p2), %v607_v18 }
  0xfe   : > { %v535_v34 = vadd.f32 %v489_v33, %v333_v31  ;;  %v518_v35 = vpop.f32.mrf.mxu3  ;;  %616 = vst [vmem:[#allocation9 + $0x20] sm:$0xff] (%p553_p2), %v600_v63 }
  0xff   : > { %v536_v36 = vadd.f32 %v518_v35, %v334_v32  ;;  %v570_v4 = vld [vmem:[#allocation2 + $0x60] sm:$0xff] (%p553_p2)  ;;  %617 = vst [vmem:[#allocation9 + $0x28] sm:$0xff] (%p553_p2), %v601_v2 }
 0x100   : > { %551 = vst [vmem:[#allocation2 + $0x78] sm:$0xff] %v535_v34  ;;  %v571_v7 = vld [vmem:[#allocation2 + $0x70] sm:$0xff] (%p553_p2)  ;;  %v592_v12 = vadd.f32 (%p553_p2), %v576_v40, %v570_v4 }
 0x101   : > { %552 = vst [vmem:[#allocation2 + $0x28] sm:$0xff] %v536_v36  ;;  %v564_v46 = vld [vmem:[#allocation2 + $0x8] sm:$0xff] (%p553_p2)  ;;  %v593_v15 = vadd.f32 (%p553_p2), %v577_v41, %v571_v7 }
 0x102   : > { %v565_v51 = vld [vmem:[#allocation2 + $0x48] sm:$0xff]  ;;  %v586_v59 = vadd.f32 %v576_v40, %v564_v46  ;;  %v608_v20 = vmul.f32 0.33333334, %v592_v12 }
 0x103   : > { %v587_v61 = vadd.f32 %v577_v41, %v565_v51  ;;  %v609_v21 = vmul.f32 0.33333334, %v593_v15 }
 0x104   : > { %v602_v5 = vmul.f32 0.33333334, %v586_v59  ;;  %624 = vst [vmem:[#allocation9 + $0x60] sm:$0xff] %v608_v20 }
 0x105   : > { %v603_v8 = vmul.f32 0.33333334, %v587_v61  ;;  %625 = vst [vmem:[#allocation9 + $0x68] sm:$0xff] %v609_v21 }
 0x106   : > { %618 = vst [vmem:[#allocation9 + $0x30] sm:$0xff] %v602_v5 }
 0x107   : > { %v572_v10 = vld [vmem:[#allocation2 + $0x78] sm:$0xff]  ;;  %619 = vst [vmem:[#allocation9 + $0x38] sm:$0xff] %v603_v8 }
 0x108   : > { %v573_v13 = vld [vmem:[#allocation2 + $0x28] sm:$0xff]  ;;  %v594_v17 = vadd.f32 %v576_v40, %v572_v10 }
 0x109   : > { %v595_v19 = vadd.f32 %v577_v41, %v573_v13 }
 0x10a   : > { %v610_v22 = vmul.f32 0.33333334, %v594_v17 }
 0x10b   : > { %v611_v23 = vmul.f32 0.33333334, %v595_v19 }
 0x10c   : > { %626 = vst [vmem:[#allocation9 + $0x70] sm:$0xff] %v610_v22 }
 0x10d   : > { %627 = vst [vmem:[#allocation9 + $0x78] sm:$0xff] %v611_v23 }
 0x10e PF: > { %p924_p3 = scmp.eq.s32.totalorder %s1223_s18, 2  ;;  %s641_s25 = sshll.u32 %s1370_s3, 4  ;;  %s642_s25 = int_to_ptr.hbm [resolvable:$true] %s641_s25 }
 0x10f   : > { %s1171_s24 = smov [#allocation9]   ;;  %s1172_s27 = smov 256  }
 0x110   : > { %s639_s26 = sshll.u32 %s1171_s24, 4  ;;  %s1173_s6 = smov 16   ;;  %s640_s26 = int_to_ptr.vmem [resolvable:$true] %s639_s26 }
 0x111   : > { %907 = dma.vmem_to_hbm [thread:$0]  (%p924_p3), %s640_s26, 2048, %s642_s25, [#allocation5], %s1172_s27, %s1172_s27, %s1173_s6  }
 0x112   : > { %1138 = dma.done.wait (%p924_p3), [#allocation5], 2048  }
 0x113   : > { %1140 = vsyncadd (%p924_p3), [#allocation5], 4294965248 }
 0x114 PF: > { %s20_s17 = sadd.s32 1, %s1163_s17   ;;  %s1379_s12 = smov %s1147_s13 }
 0x115   : > { %p17_p4 = scmp.ge.s32.totalorder %s20_s17, 5   ;;  %s1380_s13 = smov %s1151_s14 }
 0x116   : > { %s1381_s14 = smov %s1274_s20  ;;  %s1382_s15 = smov %s1159_s16 }
 0x117   : > { %s1383_s16 = smov %s1385_s29  ;;  %19 = sbr.rel (!%p17_p4) target bundleno = 10 (0xa), region = 96 }
 0x11c   :  { %658 = vsyncpa [#allocation4], 1 }
 0x11d   :  { %660 = vsyncpa [#allocation4 + $0x1], 1 }
 0x11e   :  { %661 = vsyncpa [#allocation7], 1 }
 0x11f   :  { %663 = vsyncpa [#allocation7 + $0x1], 1 }
 0x120   :  { %664 = vsyncpa [#allocation5], 1 }
 0x121   :  { %666 = vsyncpa [#allocation5 + $0x1], 1 }

</bundles_post_ra>
